<compile_context>
chip_gen: v7x
topology: tpu7x:2x2x1
jax: 0.10.0
libtpu: 0.0.40
codegen_flags: <defaults>
</compile_context>

<pallas_src>
import functools
import math

import jax
import jax.numpy as jnp
from jax import lax
from jax.experimental import pallas as pl
from jax.experimental.pallas import tpu as pltpu


@functools.lru_cache(maxsize=None)
def _roll_is_jnp_style() -> bool:
    """One-time probe of pltpu.roll's rotation convention.

    Returns True if pltpu.roll(x, 1, axis=0) behaves like jnp.roll
    (element i moves to i+1).  The conv kernel uses the result to pick the
    rotation amounts, so a convention flip can never silently mirror the conv.
    """
    def probe(x_ref, o_ref):
        o_ref[...] = pltpu.roll(x_ref[...], 1, 0)

    x = jnp.broadcast_to(jnp.arange(8, dtype=jnp.float32)[:, None], (8, 128))
    out = pl.pallas_call(
        probe, out_shape=jax.ShapeDtypeStruct((8, 128), jnp.float32))(x)
    return bool(out[1, 0] == 0.0)   # jnp.roll: row 1 receives old row 0


def _conv3x3_bn(f, H, W, w_ref, b_ref, *, relu, mask_l, mask_r, roll_jnp_style):
    """3x3 conv (pad=1, stride=1) with BN folded into weights (+ optional ReLU).

    f:      (Bt, H*W, C) float32 feature maps, row-major over (h, w) per image.
    w_ref:  (3, 3*C, P) bf16 weight ref; leading dim = kh, (kw, cin) flattened
            along lanes.  BN scale is already folded into the weights.
    b_ref:  (1, P) float32 folded BN bias.
    mask_l/mask_r: (Bt*(H+2)*W, 1) bool masks of the wrapped border columns.
    Returns (Bt, H*W, P) float32.
    """
    Bt, HW, C = f.shape
    n = (H + 2) * W                                  # rows per image incl. halo
    N = Bt * n
    P = w_ref.shape[-1]

    # Zero halo on the leading (H) axis of every image, then flatten to 2D so
    # the +-1 W shifts are one aligned sublane rotate (XLU) over all images.
    # (Cross-image wraparound only moves zeros into zero halo rows or into
    # positions that the border mask zeroes, so the flat roll is exact.)
    zrow = jnp.zeros((Bt, W, C), f.dtype)
    padc = jnp.concatenate([zrow, f, zrow], axis=1).reshape(N, C)      # f32

    shift_r, shift_l = (1, N - 1) if roll_jnp_style else (N - 1, 1)
    # Rolls/masks stay in f32 (packed-bf16 sublane rotate may unpack/repack);
    # each slab is cast to bf16 exactly once, where it is produced.
    dx0 = jnp.where(mask_l, 0.0, pltpu.roll(padc, shift_r, 0)).astype(jnp.bfloat16)
    dx2 = jnp.where(mask_r, 0.0, pltpu.roll(padc, shift_l, 0)).astype(jnp.bfloat16)
    slab = jnp.concatenate([dx0, padc.astype(jnp.bfloat16), dx2], axis=1)
    slab = slab.reshape(Bt, n, 3 * C)                                  # bf16

    # Three accumulating K=3*C matmuls (one per kh tap) instead of a single
    # K=9*C matmul on a materialized (HW, 9*C) im2col buffer.
    acc = None
    for dy in range(3):
        lhs = slab[:, dy * W:(dy + H) * W, :].reshape(Bt * HW, 3 * C)
        part = jnp.dot(lhs, w_ref[dy], preferred_element_type=jnp.float32)
        acc = part if acc is None else acc + part

    acc = acc + b_ref[...]                       # folded BN bias (scale is in w)
    if relu:
        acc = jnp.maximum(acc, 0.0)
    return acc.reshape(Bt, HW, P)


def _basic_block_kernel(x_ref, w1_ref, b1_ref, w2_ref, b2_ref, o_ref, *,
                        H, W, roll_jnp_style):
    Bt = x_ref.shape[0]
    C = x_ref.shape[-1]
    P = o_ref.shape[-1]
    HW = H * W
    n = (H + 2) * W

    # Border-column masks, hoisted: shared by both convs (JAX does not CSE the
    # iota/broadcast across the two calls).
    wpos = lax.broadcasted_iota(jnp.int32, (Bt * n, 1), 0) % W
    mask_l = wpos == 0
    mask_r = wpos == W - 1

    x = jnp.maximum(x_ref[...], 0.0).reshape(Bt, HW, C)          # x = relu(x)

    h = _conv3x3_bn(x, H, W, w1_ref, b1_ref, relu=True,
                    mask_l=mask_l, mask_r=mask_r, roll_jnp_style=roll_jnp_style)
    h = _conv3x3_bn(h, H, W, w2_ref, b2_ref, relu=False,
                    mask_l=mask_l, mask_r=mask_r, roll_jnp_style=roll_jnp_style)

    # Residual: re-read + re-relu the input (cheap VPU max) instead of keeping
    # identity live across both convs.  NO relu after the add (module spec).
    identity = jnp.maximum(x_ref[...], 0.0).reshape(Bt, HW, C)
    o_ref[...] = (h + identity).reshape(Bt, H, W, P)


def basic_block_forward(x_nhwc, packed_params, *, batch_tile=2):
    """Fused BasicBlock forward.  x_nhwc: (B, H, W, C) float32 -> same shape."""
    w1, b1, w2, b2 = packed_params
    B, H, W, C = x_nhwc.shape
    P = w1.shape[-1]
    assert w1.shape == (3, 3 * C, P) and w2.shape == (3, 3 * P, P)
    assert C == P, "stride=1 / downsample=None requires inplanes == planes"
    assert W % 8 == 0, "W must be a multiple of 8 (sublane tiling); prefer %16"

    Bt = batch_tile if (batch_tile <= B and B % batch_tile == 0) else 1

    kernel = functools.partial(
        _basic_block_kernel, H=H, W=W, roll_jnp_style=_roll_is_jnp_style())

    def const_spec(a):
        return pl.BlockSpec(a.shape, lambda b: (0,) * a.ndim)

    return pl.pallas_call(
        kernel,
        out_shape=jax.ShapeDtypeStruct((B, H, W, P), jnp.float32),
        grid_spec=pltpu.PrefetchScalarGridSpec(
            num_scalar_prefetch=0,
            grid=(B // Bt,),
            in_specs=[
                pl.BlockSpec((Bt, H, W, C), lambda b: (b, 0, 0, 0)),
                const_spec(w1), const_spec(b1),
                const_spec(w2), const_spec(b2),
            ],
            out_specs=pl.BlockSpec((Bt, H, W, P), lambda b: (b, 0, 0, 0)),
        ),
        compiler_params=pltpu.CompilerParams(
            dimension_semantics=("parallel",),
            vmem_limit_bytes=32 * 1024 * 1024),
    )(x_nhwc, w1, b1, w2, b2)


def basic_block_forward_nchw(x_nchw, packed_params):
    """PyTorch-layout adapter (prefer calling basic_block_forward in NHWC)."""
    out = basic_block_forward(jnp.transpose(x_nchw, (0, 2, 3, 1)), packed_params)
    return jnp.transpose(out, (0, 3, 1, 2))


def make_params(key, inplanes, planes, eps=1e-5):
    """Synthetic BasicBlock parameters in PyTorch layout.

    Conv weights: OIHW.  BatchNorm (affine, inference) folded into a per-channel
    scale = gamma/sqrt(var+eps) and bias = beta - mean*scale.
    """
    ks = jax.random.split(key, 10)

    def conv_w(k, cin, cout):
        return jax.random.normal(k, (cout, cin, 3, 3), jnp.float32) / math.sqrt(9 * cin)

    def bn_fold(kg, kb, km, kv, c):
        gamma = 1.0 + 0.1 * jax.random.normal(kg, (c,), jnp.float32)
        beta = 0.1 * jax.random.normal(kb, (c,), jnp.float32)
        mean = 0.1 * jax.random.normal(km, (c,), jnp.float32)
        var = 0.5 + jnp.abs(jax.random.normal(kv, (c,), jnp.float32))
        scale = gamma / jnp.sqrt(var + eps)
        bias = beta - mean * scale
        return scale, bias

    w1 = conv_w(ks[0], inplanes, planes)
    w2 = conv_w(ks[1], planes, planes)
    s1, b1 = bn_fold(ks[2], ks[3], ks[4], ks[5], planes)
    s2, b2 = bn_fold(ks[6], ks[7], ks[8], ks[9], planes)
    return (w1, s1, b1, w2, s2, b2)


def pack_params(params):
    """PyTorch-layout params -> kernel layout.

    BN scale is folded into the conv weights in f32 BEFORE the bf16 cast;
    weights are reshaped to (kh, kw*cin, cout) = (3, 3*C, P) bf16 so each kh
    chunk multiplies the (Bt*HW, 3*C) lane-concatenated dx slab.
    """
    w1, s1, b1, w2, s2, b2 = params

    def to_mat(w_oihw, scale):
        w_hwio = jnp.transpose(w_oihw, (2, 3, 1, 0)).astype(jnp.float32)  # (kh,kw,cin,cout)
        w_hwio = w_hwio * scale.reshape(1, 1, 1, -1)                       # fold BN scale
        kh, kw, cin, cout = w_hwio.shape
        return w_hwio.reshape(kh, kw * cin, cout).astype(jnp.bfloat16)

    def row(v):
        return v.reshape(1, -1).astype(jnp.float32)

    return (to_mat(w1, s1), row(b1), to_mat(w2, s2), row(b2))


def basic_block_reference(x_nhwc, params):
    """Pure-JAX f32 reference of the PyTorch BasicBlock forward (NHWC)."""
    w1, s1, b1, w2, s2, b2 = params
    dn = ("NHWC", "HWIO", "NHWC")

    def conv_bn(h, w_oihw, s, b):
        w_hwio = jnp.transpose(w_oihw, (2, 3, 1, 0))
        h = lax.conv_general_dilated(h, w_hwio, (1, 1), ((1, 1), (1, 1)),
                                     dimension_numbers=dn,
                                     precision=lax.Precision.HIGHEST)
        return h * s + b

    x = jnp.maximum(x_nhwc, 0.0)
    identity = x
    h = jnp.maximum(conv_bn(x, w1, s1, b1), 0.0)
    h = conv_bn(h, w2, s2, b2)
    return h + identity


if __name__ == "__main__":
    key = jax.random.PRNGKey(0)
    kx, kp = jax.random.split(key)

    # Small but lane-dense shapes: inplanes == planes == 128 (full lane width),
    # 16x16 spatial, batch 4 -> Bt=2 per grid step, grid=(2,) (even split
    # across v7x's two TensorCores).
    B, C, H, W = 4, 128, 16, 16
    x = jax.random.normal(kx, (B, H, W, C), jnp.float32)       # NHWC
    params = make_params(kp, C, C)

    out = jax.block_until_ready(basic_block_forward(x, pack_params(params)))

    ref = basic_block_reference(x, params)
    assert out.shape == (B, H, W, C)
    max_err = float(jnp.max(jnp.abs(out - ref)))
    # bf16 MXU operands (scale folded in f32 before the bf16 cast) vs. f32
    # reference -> loosened tolerance.
    assert jnp.allclose(out, ref, atol=5e-2, rtol=2e-2), max_err
    print("KERNEL_OK")
</pallas_src>

<mosaic_0001>
module attributes {stable_mosaic.version = 11 : i64} {
  func.func @probe(%arg0: memref<8x128xf32, #tpu.memory_space<vmem>>, %arg1: memref<8x128xf32, #tpu.memory_space<vmem>>) attributes {dimension_semantics = [], scalar_prefetch = 0 : i64, scratch_operands = 0 : i64, tpu.core_type = #tpu.core_type<tc>} {
    %c0 = arith.constant 0 : index
    %c0_0 = arith.constant 0 : index
    %0 = vector.load %arg0[%c0, %c0_0] : memref<8x128xf32, #tpu.memory_space<vmem>>, vector<8x128xf32>
    %c1_i32 = arith.constant 1 : i32
    %1 = tpu.dynamic_rotate %0 by %c1_i32 dim 0 : vector<8x128xf32>, i32 -> vector<8x128xf32>
    %c0_1 = arith.constant 0 : index
    %c0_2 = arith.constant 0 : index
    %2 = vector.load %arg1[%c0_1, %c0_2] : memref<8x128xf32, #tpu.memory_space<vmem>>, vector<8x128xf32>
    tpu.vector_store %arg1[%c0_1, %c0_2], %1 {strides = array<i32>} : memref<8x128xf32, #tpu.memory_space<vmem>>, vector<8x128xf32>,
    return
  }
}

</mosaic_0001>

<bundles_post_ra>
// kernel: tpu_custom_call.1
= control target key start
LH: loop header
LB: loop body
LE: loop exit
PB: predicated region body
PF: predicated region fallthrough
CT: control target
= control target key end

     0   :  { %6 = vsyncpa [#allocation3], 0  ;;  %s125_s0 = inlined_call_operand.hbm [shape: f32[8,128], index: 0, kind: input, shape index: {}]   ;;  %s126_s1 = inlined_call_operand.hbm [shape: f32[8,128], index: 1, kind: output, shape index: {}]  }
   0x1   :  { %7 = vsyncpa [#allocation4], 0  ;;  %s89_s6 = smov [#allocation2]   ;;  %s41_s10 = scalar_lea.hbm %s125_s0, 128 }
   0x2   :  { %s14_s7 = sshll.u32 %s89_s6, 4  ;;  %p42_p0 = scmp.ne.s32.totalorder %s125_s0, %s41_s10  ;;  %s15_s7 = int_to_ptr.vmem [resolvable:$true] %s14_s7 }
   0x3   :  { %p45_p1 = scmp.lt.u32.totalorder %s41_s10, %s125_s0 }
   0x5   :  { %p47_p2 = pnand %p45_p1, %p42_p0 }
   0x7   :  { %50 = shalt.err (!%p47_p2)
}
   0x8   :  { %s51_s15 = scalar_lea.vmem %s15_s7, 128  ;;  %p56_p4 = scmp.lt.s32.totalorder %s15_s7, %s15_s7 }
   0x9   :  { %p52_p3 = scmp.ne.s32.totalorder %s15_s7, %s51_s15  ;;  %p57_p5 = scmp.lt.s32.totalorder %s51_s15, %s51_s15 }
   0xb   :  { %p58_p6 = por %p57_p5, %p56_p4 }
   0xd   :  { %p59_p7 = pnand %p58_p6, %p52_p3 }
   0xf   :  { %62 = shalt.err (!%p59_p7)
}
  0x10   :  { %17 = dma.hbm_to_vmem [thread:$0]  %s125_s0, 128, %s15_s7, [#allocation3]  }
  0x11   :  { %85 = dma.done.wait [#allocation3], 128  }
  0x12   :  { %86 = vsyncadd [#allocation3], 4294967168  ;;  %s90_s18 = smov [#allocation5]   ;;  %v21_v0 = vld [vmem:[#allocation2] sm:$0xff] }
  0x13   :  { %s30_s19 = sshll.u32 %s90_s18, 4  ;;  %v22_v1 = vrot.slane %v21_v0, 7  ;;  %s31_s19 = int_to_ptr.vmem [resolvable:$true] %s30_s19 }
  0x14   :  { %s63_s20 = scalar_lea.vmem %s31_s19, 128  ;;  %p68_p9 = scmp.lt.s32.totalorder %s31_s19, %s31_s19 }
  0x15   :  { %23 = vst [vmem:[#allocation5] sm:$0xff] %v22_v1  ;;  %p64_p8 = scmp.ne.s32.totalorder %s31_s19, %s63_s20  ;;  %p69_p10 = scmp.lt.s32.totalorder %s63_s20, %s63_s20 }
  0x17   :  { %p70_p11 = por %p69_p10, %p68_p9 }
  0x19   :  { %p71_p12 = pnand %p70_p11, %p64_p8 }
  0x1b   :  { %74 = shalt.err (!%p71_p12)
}
  0x1c   :  { %s75_s23 = scalar_lea.hbm %s126_s1, 128 }
  0x1d   :  { %p76_p13 = scmp.ne.s32.totalorder %s126_s1, %s75_s23  ;;  %p79_p0 = scmp.lt.u32.totalorder %s75_s23, %s126_s1 }
  0x1f   :  { %p81_p1 = pnand %p79_p0, %p76_p13 }
  0x21   :  { %84 = shalt.err (!%p81_p1)
}
  0x22   :  { %33 = dma.vmem_to_hbm [thread:$0]  %s31_s19, 128, %s126_s1, [#allocation4]  }
  0x23   :  { %87 = dma.done.wait [#allocation4], 128  }
  0x24   :  { %88 = vsyncadd [#allocation4], 4294967168 }
  0x25   :  { %37 = vsyncpa [#allocation3], 1 }
  0x26   :  { %38 = vsyncpa [#allocation4], 1 }

</bundles_post_ra>
